<compile_context>
chip_gen: v6e
topology: v6e:2x2x1
jax: 0.10.0
libtpu: 0.0.40
codegen_flags: <defaults>
</compile_context>

<pallas_src>
import numpy as np
import jax
import jax.numpy as jnp
from jax.experimental import pallas as pl
from jax.experimental.pallas import tpu as pltpu


def _pick_batch_tile(B, S, C, Ny, budget_bytes=8 << 20):
    """Largest divisor of B whose per-step (double-buffered) blocks fit a VMEM budget."""
    best = 1
    for bt in range(1, B + 1):
        if B % bt:
            continue
        foot = 4 * 2 * (S * bt * C + S * bt * Ny + (bt * C) * (bt * Ny))  # f32, 2x buffered
        if foot <= budget_bytes:
            best = bt
    return best


@jax.jit
def frequency_module(x, freq_mask, w_reconstruct):
    """x: (B, S, C) f32; freq_mask: (freq_len,); w_reconstruct: (seg_num_y, freq_len)."""
    B, S, C = x.shape
    F = S // 2 + 1
    Ny = w_reconstruct.shape[0]
    assert C == F, "torch forward requires channels == freq_len == seq_len//2 + 1"

    # --- static DFT matrices (exact rfft / irfft-of-real-spectrum), numpy constants ---
    t = np.arange(S, dtype=np.float64)
    f = np.arange(F, dtype=np.float64)
    ang = 2.0 * np.pi * np.outer(f, t) / S
    dft = np.concatenate([np.cos(ang), -np.sin(ang)], axis=0).astype(np.float32)      # (2F, S)
    w = np.full((F,), 2.0)
    w[0] = 1.0
    if S % 2 == 0:
        w[S // 2] = 1.0
    idft = (np.cos(2.0 * np.pi * np.outer(t, f) / S) * (w[None, :] / S)).astype(np.float32)  # (S, F)

    # Fold freq_mask (per-channel diagonal) into the reconstruct weight: wtm[c, y] = mask[c]*W[y, c]
    wtm = jnp.asarray(freq_mask, jnp.float32)[:, None] * jnp.asarray(w_reconstruct, jnp.float32).T  # (C, Ny)

    # --- pack batch into the lane axis ---
    Bt = _pick_batch_tile(B, S, C, Ny)          # = B for the small shapes used here -> one grid step
    Bg = B // Bt
    xp = (x.astype(jnp.float32)
            .reshape(Bg, Bt, S, C)
            .transpose(0, 2, 1, 3)
            .reshape(Bg, S, Bt * C))            # xp[g, s, j*C + c] = x[g*Bt + j, s, c]
    # Shared per-batch projection -> block-diagonal weight (avoids any in-kernel reshape/transpose).
    wblk = jnp.kron(jnp.eye(Bt, dtype=jnp.float32), wtm)                               # (Bt*C, Bt*Ny)

    def kernel(x_ref, dft_ref, idft_ref, wblk_ref, o_ref):
        xs = x_ref[0]                                                                  # (S, Bt*C)
        st = jnp.dot(dft_ref[...], xs, preferred_element_type=jnp.float32)             # (2F, Bt*C)
        re = st[:F, :]
        im = st[F:, :]
        amp = jnp.sqrt(re * re + im * im)                                              # f32 VPU/EUP
        g = jnp.dot(amp, wblk_ref[...], preferred_element_type=jnp.float32)            # (F, Bt*Ny)
        out = jnp.dot(idft_ref[...], g, preferred_element_type=jnp.float32)            # (S, Bt*Ny)
        o_ref[0] = out.astype(o_ref.dtype)

    out_packed = pl.pallas_call(
        kernel,
        out_shape=jax.ShapeDtypeStruct((Bg, S, Bt * Ny), jnp.float32),
        grid_spec=pltpu.PrefetchScalarGridSpec(
            num_scalar_prefetch=0,
            grid=(Bg,),
            in_specs=[
                pl.BlockSpec((1, S, Bt * C), lambda g: (g, 0, 0)),     # batch-packed x
                pl.BlockSpec((2 * F, S), lambda g: (0, 0)),            # stacked [cos; -sin] DFT
                pl.BlockSpec((S, F), lambda g: (0, 0)),                # irfft-of-real-spectrum
                pl.BlockSpec((Bt * C, Bt * Ny), lambda g: (0, 0)),     # kron(I, mask*W^T)
            ],
            out_specs=pl.BlockSpec((1, S, Bt * Ny), lambda g: (g, 0, 0)),
        ),
        compiler_params=pltpu.CompilerParams(dimension_semantics=("parallel",)),
    )(xp, jnp.asarray(dft), jnp.asarray(idft), wblk)

    # unpack: out_packed[g, s, j*Ny + y] -> (B, S, Ny)
    return (out_packed.reshape(Bg, S, Bt, Ny)
                      .transpose(0, 2, 1, 3)
                      .reshape(B, S, Ny))


if __name__ == "__main__":
    B, S = 2, 16
    F = S // 2 + 1          # freq_len = 9
    C = F                   # channels must equal freq_len (see note above)
    seg_num_y = 8
    seg_num_x = 4           # unused by forward, kept for signature parity

    key = jax.random.PRNGKey(0)
    kx, km, kw = jax.random.split(key, 3)
    x = jax.random.normal(kx, (B, S, C), dtype=jnp.float32)
    # parameters, deterministic in-script (match torch init distributions):
    freq_mask = jax.random.normal(km, (F,), dtype=jnp.float32) / jnp.sqrt(float(F))
    bound = 1.0 / np.sqrt(F)
    w_rec = jax.random.uniform(kw, (seg_num_y, F), minval=-bound, maxval=bound,
                               dtype=jnp.float32)

    out = jax.block_until_ready(frequency_module(x, freq_mask, w_rec))
    assert out.shape == (B, S, seg_num_y)

    # semantic reference (plain JAX FFT), same math as the torch forward
    freq = jnp.fft.rfft(x, axis=1)
    amp = jnp.abs(freq)
    masked = amp * freq_mask                       # broadcast over last (channel) axis
    ifft_res = jnp.fft.irfft(masked, n=S, axis=1)
    ref = jnp.einsum('bsc,yc->bsy', ifft_res, w_rec,
                     precision=jax.lax.Precision.HIGHEST)
    # kernel matmuls are bf16-in / f32-acc (single-pass MXU); tolerance covers that.
    np.testing.assert_allclose(np.asarray(out), np.asarray(ref), rtol=2e-2, atol=2e-2)

    print("KERNEL_OK")
</pallas_src>

<mosaic_0001>
module attributes {stable_mosaic.version = 11 : i64} {
  func.func @kernel(%arg0: i32, %arg1: memref<1x16x18xf32, #tpu.memory_space<vmem>>, %arg2: memref<18x16xf32, #tpu.memory_space<vmem>>, %arg3: memref<16x9xf32, #tpu.memory_space<vmem>>, %arg4: memref<18x16xf32, #tpu.memory_space<vmem>>, %arg5: memref<1x16x16xf32, #tpu.memory_space<vmem>>) attributes {dimension_semantics = [#tpu.dimension_semantics<parallel>], iteration_bounds = array<i64: 1>, scalar_prefetch = 0 : i64, scratch_operands = 0 : i64, tpu.core_type = #tpu.core_type<tc>, window_params = [{transform_indices = @transform_0, window_bounds = array<i64: 1, 16, 18>}, {pipeline_mode = #tpu.pipeline_mode<synchronous>, transform_indices = @transform_1, window_bounds = array<i64: 18, 16>}, {pipeline_mode = #tpu.pipeline_mode<synchronous>, transform_indices = @transform_2, window_bounds = array<i64: 16, 9>}, {pipeline_mode = #tpu.pipeline_mode<synchronous>, transform_indices = @transform_3, window_bounds = array<i64: 18, 16>}, {transform_indices = @transform_4, window_bounds = array<i64: 1, 16, 16>}]} {
    %c0 = arith.constant 0 : index
    %c0_0 = arith.constant 0 : index
    %c0_1 = arith.constant 0 : index
    %0 = vector.load %arg1[%c0, %c0_0, %c0_1] : memref<1x16x18xf32, #tpu.memory_space<vmem>>, vector<1x16x18xf32>
    %1 = vector.shape_cast %0 : vector<1x16x18xf32> to vector<16x18xf32>
    %c0_2 = arith.constant 0 : index
    %c0_3 = arith.constant 0 : index
    %2 = vector.load %arg2[%c0_2, %c0_3] : memref<18x16xf32, #tpu.memory_space<vmem>>, vector<18x16xf32>
    %cst = arith.constant dense<0.000000e+00> : vector<18x18xf32>
    %3 = tpu.matmul %2, %1, %cst {dimension_numbers = #tpu.dot_dimension_numbers<[1], [0], [0], [1], [0, 0, 1, 1], [], []>} : vector<18x16xf32>, vector<16x18xf32>, vector<18x18xf32> -> vector<18x18xf32>
    %4 = vector.extract_strided_slice %3 {offsets = [0, 0], sizes = [9, 18], strides = [1, 1]} : vector<18x18xf32> to vector<9x18xf32>
    %5 = vector.extract_strided_slice %3 {offsets = [9, 0], sizes = [9, 18], strides = [1, 1]} : vector<18x18xf32> to vector<9x18xf32>
    %6 = arith.mulf %4, %4 : vector<9x18xf32>
    %7 = arith.mulf %5, %5 : vector<9x18xf32>
    %8 = arith.addf %6, %7 : vector<9x18xf32>
    %9 = math.sqrt %8 : vector<9x18xf32>
    %c0_4 = arith.constant 0 : index
    %c0_5 = arith.constant 0 : index
    %10 = vector.load %arg4[%c0_4, %c0_5] : memref<18x16xf32, #tpu.memory_space<vmem>>, vector<18x16xf32>
    %cst_6 = arith.constant dense<0.000000e+00> : vector<9x16xf32>
    %11 = tpu.matmul %9, %10, %cst_6 {dimension_numbers = #tpu.dot_dimension_numbers<[1], [0], [0], [1], [0, 0, 1, 1], [], []>} : vector<9x18xf32>, vector<18x16xf32>, vector<9x16xf32> -> vector<9x16xf32>
    %c0_7 = arith.constant 0 : index
    %c0_8 = arith.constant 0 : index
    %12 = vector.load %arg3[%c0_7, %c0_8] : memref<16x9xf32, #tpu.memory_space<vmem>>, vector<16x9xf32>
    %cst_9 = arith.constant dense<0.000000e+00> : vector<16x16xf32>
    %13 = tpu.matmul %12, %11, %cst_9 {dimension_numbers = #tpu.dot_dimension_numbers<[1], [0], [0], [1], [0, 0, 1, 1], [], []>} : vector<16x9xf32>, vector<9x16xf32>, vector<16x16xf32> -> vector<16x16xf32>
    %c0_10 = arith.constant 0 : index
    %c0_11 = arith.constant 0 : index
    %c0_12 = arith.constant 0 : index
    %14 = vector.load %arg5[%c0_10, %c0_11, %c0_12] : memref<1x16x16xf32, #tpu.memory_space<vmem>>, vector<1x16x16xf32>
    %15 = vector.shape_cast %14 : vector<1x16x16xf32> to vector<16x16xf32>
    %16 = vector.shape_cast %13 : vector<16x16xf32> to vector<1x16x16xf32>
    tpu.vector_store %arg5[%c0_10, %c0_11, %c0_12], %16 {strides = array<i32>} : memref<1x16x16xf32, #tpu.memory_space<vmem>>, vector<1x16x16xf32>,
    return
  }
  func.func @transform_0(%arg0: i32) -> (i32, i32, i32) {
    %c0_i32 = arith.constant 0 : i32
    %c0_i32_0 = arith.constant 0 : i32
    %c0_i32_1 = arith.constant 0 : i32
    return %arg0, %c0_i32, %c0_i32_0 : i32, i32, i32
  }
  func.func @transform_1(%arg0: i32) -> (i32, i32) {
    %c0_i32 = arith.constant 0 : i32
    %c0_i32_0 = arith.constant 0 : i32
    %c0_i32_1 = arith.constant 0 : i32
    return %c0_i32, %c0_i32_0 : i32, i32
  }
  func.func @transform_2(%arg0: i32) -> (i32, i32) {
    %c0_i32 = arith.constant 0 : i32
    %c0_i32_0 = arith.constant 0 : i32
    %c0_i32_1 = arith.constant 0 : i32
    return %c0_i32, %c0_i32_0 : i32, i32
  }
  func.func @transform_3(%arg0: i32) -> (i32, i32) {
    %c0_i32 = arith.constant 0 : i32
    %c0_i32_0 = arith.constant 0 : i32
    %c0_i32_1 = arith.constant 0 : i32
    return %c0_i32, %c0_i32_0 : i32, i32
  }
  func.func @transform_4(%arg0: i32) -> (i32, i32, i32) {
    %c0_i32 = arith.constant 0 : i32
    %c0_i32_0 = arith.constant 0 : i32
    %c0_i32_1 = arith.constant 0 : i32
    return %arg0, %c0_i32, %c0_i32_0 : i32, i32, i32
  }
}

</mosaic_0001>

<bundles_post_ra>
// kernel: frequency_module.1
= control target key start
LH: loop header
LB: loop body
LE: loop exit
PB: predicated region body
PF: predicated region fallthrough
CT: control target
= control target key end

     0   :  { %v380_v0 = vmov 0.0   ;;  %vm381_vm0 = vmmov 0   ;;  %vm22_vm1 = vcmask 130048   ;;  %vm149_vm2 = vcmask 1041408   ;;  %s448_s0 = inlined_call_operand.vmem [shape: f32[1,16,18], index: 0, kind: input, shape index: {}]   ;;  %s449_s1 = inlined_call_operand.vmem [shape: f32[18,16], index: 1, kind: input, shape index: {}]   ;;  %s450_s3 = inlined_call_operand.vmem [shape: f32[18,16], index: 3, kind: input, shape index: {}]   ;;  %s451_s2 = inlined_call_operand.vmem [shape: f32[16,9], index: 2, kind: input, shape index: {}]   ;;  %s452_s4 = inlined_call_operand.vmem [shape: f32[1,16,16], index: 4, kind: output, shape index: {}]  }
   0x1   :  { %345 = vmatprep.subr.mxu0 %v380_v0  ;;  %v18_v1 = vld [vmem:[%s448_s0 + $0x8] sm:$0xff]  ;;  %v17_v2 = vld [vmem:[%s448_s0] sm:$0xff]  ;;  %349 = vmatprep.mubr.msk.f32.mxu0 %vm381_vm0, %v380_v0  ;;  %v21_v5 = vld [vmem:[%s449_s1 + $0x10] sm:$0x3]  ;;  %vm117_vm3 = vcmask 1046528   ;;  %vm142_vm6 = vcmask 146432  }
   0x2   :  { %346 = vmatpush3.msra.mxu0 %v18_v1  ;;  %v19_v3 = vld [vmem:[%s449_s1] sm:$0xff]  ;;  %v20_v4 = vld [vmem:[%s449_s1 + $0x8] sm:$0xff]  ;;  %v141_v6 = vld [vmem:[%s450_s3 + $0x10] sm:$0x3]  ;;  %vm230_vm9 = vcmask 72704   ;;  %vm237_vm10 = vcmask 1040384  }
   0x3   :  { %347 = vmatprep.subr.mxu0 %v380_v0  ;;  %v140_v7 = vld [vmem:[%s450_s3 + $0x8] sm:$0xff]  ;;  %358 = vmatprep.subr.msk.mxu1 %vm149_vm2, %v141_v6  ;;  %v139_v8 = vld [vmem:[%s450_s3] sm:$0xff] }
   0x4   :  { %348 = vmatpush3.msra.mxu0 %v17_v2  ;;  %359 = vmatpush3.msk.msra.mxu1 %vm149_vm2, %v141_v6  ;;  %v228_v33 = vld [vmem:[%s451_s2] sm:$0xff]  ;;  %v229_v36 = vld [vmem:[%s451_s2 + $0x8] sm:$0xff] }
   0x5   :  { %350 = vmatmul.mubr.msk.f32.vlgmr.msra.gmra.mxu0 %vm22_vm1, %v19_v3  ;;  %360 = vmatprep.subr.mxu1 %v140_v7 }
   0x6   :  { %352 = vmatprep.mubr.msk.f32.mxu0 %vm381_vm0, %v380_v0  ;;  %361 = vmatpush3.msra.mxu1 %v140_v7 }
   0x7   :  { %362 = vmatprep.subr.mxu1 %v139_v8 }
   0x8   :  { %363 = vmatpush3.msra.mxu1 %v139_v8 }
   0x9   :  { %353 = vmatmul.mubr.msk.f32.gmra.mxu0 %vm22_vm1, %v20_v4 }
   0xa   :  { %355 = vmatprep.mubr.msk.f32.mxu0 %vm381_vm0, %v380_v0 }
   0xd   :  { %356 = vmatmul.mubr.msk.f32.gmra.mxu0 %vm22_vm1, %v21_v5 }
  0xc5   :  { %v98_v9 = vpop.f32.mrf.mxu0 }
  0xc6   :  { %v112_v19 = vmul.f32 %v98_v9, %v98_v9 }
  0xc7   :  { %v351_v10 = vpop.f32.mrf.mxu0 }
  0xc9   :  { %v103_v11 = vpop.f32.mrf.mxu0 }
  0xca   :  { %v113_v13 = vmul.f32 %v103_v11, %v103_v11 }
  0xcb   :  { %v354_v12 = vpop.f32.mrf.mxu0 }
  0xcc   :  { %v118_v17 = vrot.slane %v113_v13, 1 }
  0xcd   :  { %v108_v14 = vpop.f32.mrf.mxu0 }
  0xce   :  { %v114_v15 = vmul.f32 %v108_v14, %v108_v14 }
  0xcf   :  { %v357_v16 = vpop.f32.mrf.mxu0 }
  0xd0   :  { %v119_v18 = vrot.slane %v114_v15, 1 }
  0xd2   :  { %v120_v20 = vsel %vm117_vm3, %v118_v17, %v119_v18  ;;  %v124_v21 = vadd.f32 %v119_v18, %v113_v13 }
  0xd3   :  { %v123_v22 = vadd.f32 %v120_v20, %v112_v19 }
  0xd4   :  { %376 = vrsqrt.f32 %v124_v21  ;;  %vm134_vm4 = vcmp.eq.f32.partialorder %v124_v21, inf  ;;  %v137_v30 = vand.u32 2147483648, %v124_v21  ;;  %vm136_vm8 = vcmp.eq.f32.partialorder %v124_v21, 0.0 }
  0xd5   :  { %378 = vrsqrt.f32 %v123_v22  ;;  %vm127_vm5 = vcmp.eq.f32.partialorder %v123_v22, inf  ;;  %v130_v27 = vand.u32 2147483648, %v123_v22  ;;  %vm129_vm7 = vcmp.eq.f32.partialorder %v123_v22, 0.0 }
  0xe1   :  { %v377_v23 = vpop.eup %376 }
  0xe2   :  { %v379_v24 = vpop.eup %378  ;;  %v133_v25 = vmul.f32 %v377_v23, %v124_v21 }
  0xe3   :  { %v126_v26 = vmul.f32 %v379_v24, %v123_v22 }
  0xe4   :  { %v135_v28 = vsel %vm134_vm4, %v124_v21, %v133_v25 }
  0xe5   :  { %v128_v29 = vsel %vm127_vm5, %v123_v22, %v126_v26  ;;  %v138_v32 = vsel %vm136_vm8, %v137_v30, %v135_v28 }
  0xe6   :  { %v131_v31 = vsel %vm129_vm7, %v130_v27, %v128_v29 }
  0xe7   :  { %364 = vmatprep.mubr.msk.f32.mxu1 %vm142_vm6, %v131_v31 }
  0xe8   :  { %365 = vmatmul.mubr.msk.f32.vlgmr.msra.gmra.mxu1 %vm142_vm6, %v138_v32 }
  0xe9   :  { %371 = vmatprep.mubr.msk.f32.mxu1 %vm230_vm9, %v228_v33 }
 0x1a8   :  { %v366_v34 = vpop.f32.mrf.mxu1 }
 0x1a9   :  { %367 = vmatprep.subr.msk.mxu1 %vm237_vm10, %v366_v34 }
 0x1aa   :  { %v219_v35 = vpop.f32.mrf.mxu1  ;;  %368 = vmatpush3.msk.msra.mxu1 %vm237_vm10, %v366_v34 }
 0x1ab   :  { %369 = vmatprep.subr.mxu1 %v219_v35 }
 0x1ac   :  { %370 = vmatpush3.msra.mxu1 %v219_v35 }
 0x1ad   :  { %372 = vmatmul.mubr.msk.f32.vlgmr.msra.gmra.mxu1 %vm230_vm9, %v229_v36 }
 0x26d   :  { %v373_v37 = vpop.f32.mrf.mxu1 }
 0x26e   :  { %317 = vst.msk [vmem:[%s452_s4 + $0x8] sm:$0xff] %vm22_vm1, %v373_v37 }
 0x26f   :  { %v307_v38 = vpop.f32.mrf.mxu1 }
 0x270   :  { %316 = vst.msk [vmem:[%s452_s4] sm:$0xff] %vm22_vm1, %v307_v38 }

</bundles_post_ra>
